<compile_context>
chip_gen: v7x
topology: tpu7x:2x2x1
jax: 0.10.0
libtpu: 0.0.40
codegen_flags: <defaults>
</compile_context>

<pallas_src>
import jax
import jax.numpy as jnp
from jax.experimental import pallas as pl
from jax.experimental.pallas import tpu as pltpu


def _build_embedding(max_steps: int) -> jnp.ndarray:
    steps = jnp.arange(max_steps, dtype=jnp.float32)[:, None]          # (T, 1)
    dims = jnp.arange(64, dtype=jnp.float32)[None, :]                  # (1, 64)
    table = steps * 10.0 ** (dims * 4.0 / 63.0)                        # (T, 64)
    return jnp.concatenate([jnp.sin(table), jnp.cos(table)], axis=1)   # (T, 128)


def _make_kernel(batch: int, t_pad: int):
    def kernel(step_ref, htab_ref, w2_ref, b2_ref, o_ref):
        # step_ref : VMEM (B, 1)      int32   clamped diffusion-step indices
        # htab_ref : VMEM (T_pad,512) bf16    precomputed layer-1 output table
        # w2_ref   : VMEM (512, 512)  bf16
        # b2_ref   : VMEM (1, 512)    f32
        # o_ref    : VMEM (B, 512)    f32

        # One-hot MXU gather of the precomputed layer-1 rows.
        iota = jax.lax.broadcasted_iota(jnp.int32, (batch, t_pad), 1)
        onehot = (iota == step_ref[...]).astype(jnp.bfloat16)          # (B, T_pad)
        h = jnp.dot(onehot, htab_ref[...],
                    preferred_element_type=jnp.float32)                # (B, 512) f32

        # SiLU after layer 1 (f32 elementwise).
        h = h * jax.nn.sigmoid(h)

        # Linear(512, 512) + SiLU.  bf16 MXU inputs, f32 accumulate, f32 math.
        y = jnp.dot(h.astype(jnp.bfloat16), w2_ref[...],
                    preferred_element_type=jnp.float32) + b2_ref[...]
        y = y * jax.nn.sigmoid(y)

        o_ref[...] = y.astype(o_ref.dtype)

    return kernel


def diffusion_embedding_forward(diffusion_step, h_table, w2, b2):
    """diffusion_step: int32 (B,).  h_table: (T_pad, 512) bf16 = emb @ W1 + b1.
    Returns float32 (B, 512)."""
    B = diffusion_step.shape[0]
    T_pad = h_table.shape[0]

    # Clamp for safety (one-hot gather is OOB-safe anyway, but a bad index
    # would otherwise silently produce a zero row).
    steps = jnp.clip(diffusion_step.astype(jnp.int32), 0, T_pad - 1).reshape(B, 1)

    flops = 2 * B * (T_pad * 512 + 512 * 512) + 6 * B * 512
    bytes_accessed = (
        steps.size * 4
        + h_table.size * 2          # bf16 layer-1 table
        + w2.size * 2               # bf16 weights
        + b2.size * 4               # f32 bias
        + B * 512 * 4               # output
    )

    return pl.pallas_call(
        _make_kernel(B, T_pad),
        out_shape=jax.ShapeDtypeStruct((B, 512), jnp.float32),
        in_specs=[
            pl.BlockSpec(memory_space=pltpu.MemorySpace.VMEM),   # steps (B,1) i32
            pl.BlockSpec(memory_space=pltpu.MemorySpace.VMEM),   # h_table bf16
            pl.BlockSpec(memory_space=pltpu.MemorySpace.VMEM),   # w2 bf16
            pl.BlockSpec(memory_space=pltpu.MemorySpace.VMEM),   # b2 f32
        ],
        out_specs=pl.BlockSpec(memory_space=pltpu.MemorySpace.VMEM),
        cost_estimate=pl.CostEstimate(
            flops=flops,
            transcendentals=2 * B * 512,
            bytes_accessed=bytes_accessed,
        ),
    )(steps, h_table, w2, b2)


def build_h_table(embedding, w1, b1, max_steps: int, pad_to: int) -> jnp.ndarray:
    """Precompute layer-1 output for every integer diffusion step, bf16,
    padded with zero rows to a sublane-friendly row count."""
    h = jnp.dot(embedding, w1, preferred_element_type=jnp.float32) + b1   # (T, 512)
    h = h.astype(jnp.bfloat16)
    pad_rows = pad_to - max_steps
    return jnp.pad(h, ((0, pad_rows), (0, 0)))


def _reference(diffusion_step, h_table, w2, b2):
    # Mirrors the kernel's numerics (bf16 table/weights, f32 accumulate + math).
    h = h_table[diffusion_step].astype(jnp.float32)
    h = h * jax.nn.sigmoid(h)
    y = jnp.dot(h.astype(jnp.bfloat16), w2,
                preferred_element_type=jnp.float32) + b2
    return y * jax.nn.sigmoid(y)


if __name__ == "__main__":
    max_steps = 50
    T_pad = 64          # pad rows to a bf16-sublane-friendly multiple
    B = 8               # batch of diffusion steps

    key = jax.random.PRNGKey(0)
    k1, k2, k3, k4, k5 = jax.random.split(key, 5)

    embedding = _build_embedding(max_steps)                            # (50, 128) f32

    # Synthetic parameters.  PyTorch Linear weights are (out, in); we store them
    # transposed as (in, out) so the kernel computes x @ W + b.
    w1 = jax.random.normal(k1, (128, 512), dtype=jnp.float32) / jnp.sqrt(128.0)
    b1 = jax.random.normal(k2, (1, 512), dtype=jnp.float32) * 0.01
    w2 = (jax.random.normal(k3, (512, 512), dtype=jnp.float32)
          / jnp.sqrt(512.0)).astype(jnp.bfloat16)
    b2 = jax.random.normal(k4, (1, 512), dtype=jnp.float32) * 0.01

    # Precompute layer 1 as a lookup table (done once, outside the kernel).
    h_table = build_h_table(embedding, w1, b1, max_steps, T_pad)       # (64, 512) bf16

    diffusion_step = jax.random.randint(k5, (B,), 0, max_steps, dtype=jnp.int32)

    out = diffusion_embedding_forward(diffusion_step, h_table, w2, b2)
    out = jax.block_until_ready(out)

    ref = _reference(diffusion_step, h_table, w2, b2)
    assert out.shape == (B, 512)
    assert jnp.allclose(out, ref, atol=1e-2, rtol=1e-2), "mismatch vs reference"

    print("KERNEL_OK")
</pallas_src>

<mosaic_0001>
module attributes {stable_mosaic.version = 11 : i64} {
  func.func @kernel(%arg0: memref<8x1xi32, #tpu.memory_space<vmem>>, %arg1: memref<64x512xbf16, #tpu.memory_space<vmem>>, %arg2: memref<512x512xbf16, #tpu.memory_space<vmem>>, %arg3: memref<1x512xf32, #tpu.memory_space<vmem>>, %arg4: memref<8x512xf32, #tpu.memory_space<vmem>>) attributes {dimension_semantics = [], scalar_prefetch = 0 : i64, scratch_operands = 0 : i64, tpu.core_type = #tpu.core_type<tc>} {
    %0 = tpu.iota {dimensions = array<i32: 1>} : vector<8x64xi32>
    %c0 = arith.constant 0 : index
    %c0_0 = arith.constant 0 : index
    %1 = vector.load %arg0[%c0, %c0_0] : memref<8x1xi32, #tpu.memory_space<vmem>>, vector<8x1xi32>
    %2 = vector.broadcast %1 : vector<8x1xi32> to vector<8x64xi32>
    %3 = arith.cmpi eq, %0, %2 : vector<8x64xi32>
    %4 = arith.extui %3 : vector<8x64xi1> to vector<8x64xi32>
    %5 = arith.sitofp %4 : vector<8x64xi32> to vector<8x64xf32>
    %6 = arith.truncf %5 : vector<8x64xf32> to vector<8x64xbf16>
    %c0_1 = arith.constant 0 : index
    %c0_2 = arith.constant 0 : index
    %7 = vector.load %arg1[%c0_1, %c0_2] : memref<64x512xbf16, #tpu.memory_space<vmem>>, vector<64x512xbf16>
    %cst = arith.constant dense<0.000000e+00> : vector<8x512xf32>
    %8 = tpu.matmul %6, %7, %cst {dimension_numbers = #tpu.dot_dimension_numbers<[1], [0], [0], [1], [0, 0, 1, 1], [], []>} : vector<8x64xbf16>, vector<64x512xbf16>, vector<8x512xf32> -> vector<8x512xf32>
    %9 = arith.negf %8 : vector<8x512xf32>
    %10 = math.exp %9 : vector<8x512xf32>
    %cst_3 = arith.constant 1.000000e+00 : f32
    %11 = vector.broadcast %cst_3 : f32 to vector<8x512xf32>
    %12 = arith.addf %11, %10 : vector<8x512xf32>
    %13 = arith.divf %11, %12 : vector<8x512xf32>
    %14 = arith.mulf %8, %13 : vector<8x512xf32>
    %15 = arith.truncf %14 : vector<8x512xf32> to vector<8x512xbf16>
    %c0_4 = arith.constant 0 : index
    %c0_5 = arith.constant 0 : index
    %16 = vector.load %arg2[%c0_4, %c0_5] : memref<512x512xbf16, #tpu.memory_space<vmem>>, vector<512x512xbf16>
    %cst_6 = arith.constant dense<0.000000e+00> : vector<8x512xf32>
    %17 = tpu.matmul %15, %16, %cst_6 {dimension_numbers = #tpu.dot_dimension_numbers<[1], [0], [0], [1], [0, 0, 1, 1], [], []>} : vector<8x512xbf16>, vector<512x512xbf16>, vector<8x512xf32> -> vector<8x512xf32>
    %c0_7 = arith.constant 0 : index
    %c0_8 = arith.constant 0 : index
    %18 = vector.load %arg3[%c0_7, %c0_8] : memref<1x512xf32, #tpu.memory_space<vmem>>, vector<1x512xf32>
    %19 = vector.broadcast %18 : vector<1x512xf32> to vector<8x512xf32>
    %20 = arith.addf %17, %19 : vector<8x512xf32>
    %21 = arith.negf %20 : vector<8x512xf32>
    %22 = math.exp %21 : vector<8x512xf32>
    %cst_9 = arith.constant 1.000000e+00 : f32
    %23 = vector.broadcast %cst_9 : f32 to vector<8x512xf32>
    %24 = arith.addf %23, %22 : vector<8x512xf32>
    %25 = arith.divf %23, %24 : vector<8x512xf32>
    %26 = arith.mulf %20, %25 : vector<8x512xf32>
    %c0_10 = arith.constant 0 : index
    %c0_11 = arith.constant 0 : index
    %27 = vector.load %arg4[%c0_10, %c0_11] : memref<8x512xf32, #tpu.memory_space<vmem>>, vector<8x512xf32>
    tpu.vector_store %arg4[%c0_10, %c0_11], %26 {strides = array<i32>} : memref<8x512xf32, #tpu.memory_space<vmem>>, vector<8x512xf32>,
    return
  }
}

</mosaic_0001>

<bundles_post_ra>
// kernel: tpu_custom_call.1
= control target key start
LH: loop header
LB: loop body
LE: loop exit
PB: predicated region body
PF: predicated region fallthrough
CT: control target
= control target key end

     0   :  { %9 = vsyncpa [#allocation3], 0  ;;  %s1848_s0 = inlined_call_operand.vmem [shape: s32[8,1], index: 0, kind: input, shape index: {}]   ;;  %s1849_s1 = inlined_call_operand.hbm [shape: bf16[64,512], index: 1, kind: input, shape index: {}]   ;;  %s1850_s2 = inlined_call_operand.hbm [shape: bf16[512,512], index: 2, kind: input, shape index: {}]   ;;  %s1851_s3 = inlined_call_operand.vmem [shape: f32[1,512], index: 3, kind: input, shape index: {}]   ;;  %s1852_s4 = inlined_call_operand.hbm [shape: f32[8,512], index: 4, kind: output, shape index: {}]  }
   0x1   :  { %10 = vsyncpa [#allocation6], 0 }
   0x2   :  { %11 = vsyncpa [#allocation4], 0  ;;  %s1768_s15 = smov [#allocation2]   ;;  %s1696_s19 = scalar_lea.hbm %s1849_s1, 2048 }
   0x3   :  { %s19_s16 = sshll.u32 %s1768_s15, 4  ;;  %p1697_p0 = scmp.ne.s32.totalorder %s1849_s1, %s1696_s19  ;;  %s20_s16 = int_to_ptr.vmem [resolvable:$true] %s19_s16 }
   0x4   :  { %p1700_p1 = scmp.lt.u32.totalorder %s1696_s19, %s1849_s1 }
   0x6   :  { %p1702_p2 = pnand %p1700_p1, %p1697_p0 }
   0x8   :  { %1705 = shalt.err (!%p1702_p2)
}
   0x9   :  { %s1706_s24 = scalar_lea.vmem %s20_s16, 2048  ;;  %p1711_p4 = scmp.lt.s32.totalorder %s20_s16, %s20_s16 }
   0xa   :  { %p1707_p3 = scmp.ne.s32.totalorder %s20_s16, %s1706_s24  ;;  %p1712_p5 = scmp.lt.s32.totalorder %s1706_s24, %s1706_s24 }
   0xc   :  { %p1713_p6 = por %p1712_p5, %p1711_p4 }
   0xe   :  { %p1714_p7 = pnand %p1713_p6, %p1707_p3 }
  0x10   :  { %1717 = shalt.err (!%p1714_p7)
}
  0x11   :  { %s1769_s25 = smov 256   ;;  %s1770_s26 = smov 16  }
  0x12   :  { %25 = dma.hbm_to_vmem [thread:$0]  %s1849_s1, 2048, %s20_s16, [#allocation3], %s1769_s25, %s1769_s25, %s1770_s26  }
  0x13   :  { %s1771_s29 = smov [#allocation5]   ;;  %s1718_s7 = scalar_lea.hbm %s1850_s2, 16384 }
  0x14   :  { %s31_s30 = sshll.u32 %s1771_s29, 4  ;;  %p1719_p8 = scmp.ne.s32.totalorder %s1850_s2, %s1718_s7  ;;  %s32_s30 = int_to_ptr.vmem [resolvable:$true] %s31_s30 }
  0x15   :  { %p1722_p9 = scmp.lt.u32.totalorder %s1718_s7, %s1850_s2 }
  0x17   :  { %p1724_p10 = pnand %p1722_p9, %p1719_p8 }
  0x19   :  { %1727 = shalt.err (!%p1724_p10)
}
  0x1a   :  { %s1728_s12 = scalar_lea.vmem %s32_s30, 16384  ;;  %p1733_p12 = scmp.lt.s32.totalorder %s32_s30, %s32_s30 }
  0x1b   :  { %p1729_p11 = scmp.ne.s32.totalorder %s32_s30, %s1728_s12  ;;  %p1734_p13 = scmp.lt.s32.totalorder %s1728_s12, %s1728_s12 }
  0x1d   :  { %p1735_p0 = por %p1734_p13, %p1733_p12 }
  0x1f   :  { %p1736_p1 = pnand %p1735_p0, %p1729_p11 }
  0x21   :  { %1739 = shalt.err (!%p1736_p1)
}
  0x22   :  { %37 = dma.hbm_to_vmem [thread:$0]  %s1850_s2, 16384, %s32_s30, [#allocation6], %s1769_s25, %s1769_s25, %s1770_s26  }
  0x23   :  { %1762 = dma.done.wait [#allocation3], 2048  }
  0x24   :  { %1763 = vsyncadd [#allocation3], 4294965248 }
  0x25   :  { %1764 = dma.done.wait [#allocation6], 16384  }
  0x26   :  { %1765 = vsyncadd [#allocation6], 4294950912  ;;  %v1772_v0 = vmov 0   ;;  %v49_v1 = vld [vmem:[%s1848_s0] sm:$0xff]  ;;  %v1450_v3 = vld [vmem:[#allocation2 + $0xc] ss:$16 sps:$4 sm:$0xff]   ;;  %v47_v20 = vlaneseq }
  0x27   :  { %1447 = vset.pattern.permute.xlu0 %v1772_v0  ;;  %189 = vmatprep.mubr.bf16.mxu0 %v1772_v0  ;;  %v1448_v2 = vld [vmem:[#allocation2 + $0x4] ss:$16 sps:$4 sm:$0xff]   ;;  %v1452_v4 = vld [vmem:[#allocation2] ss:$16 sps:$4 sm:$0xff]   ;;  %v1453_v5 = vld [vmem:[#allocation2 + $0x8] ss:$16 sps:$4 sm:$0xff]  }
  0x28   :  { %230 = vmatprep.mubr.bf16.mxu1 %v1772_v0  ;;  %51 = vperm.xlu0 %1447, %v49_v1   ;;  %v1454_v6 = vld [vmem:[#allocation2 + $0x24] ss:$16 sps:$4 sm:$0xff]   ;;  %v1456_v7 = vld [vmem:[#allocation2 + $0x2c] ss:$16 sps:$4 sm:$0xff]   ;;  %v1458_v8 = vld [vmem:[#allocation2 + $0x20] ss:$16 sps:$4 sm:$0xff]  }
  0x29   :  { %157 = vmatprep.subr.bf16.mxu0 %v1448_v2  ;;  %198 = vmatprep.subr.bf16.mxu1 %v1450_v3  ;;  %v1459_v9 = vld [vmem:[#allocation2 + $0x28] ss:$16 sps:$4 sm:$0xff]   ;;  %v1460_v10 = vld [vmem:[#allocation2 + $0x44] ss:$16 sps:$4 sm:$0xff]   ;;  %v1462_v11 = vld [vmem:[#allocation2 + $0x4c] ss:$16 sps:$4 sm:$0xff]  }
  0x2a   :  { %158 = vmatpush1.bf16.msra.mxu0 %v1452_v4  ;;  %199 = vmatpush1.bf16.msra.mxu1 %v1453_v5  ;;  %v1464_v12 = vld [vmem:[#allocation2 + $0x40] ss:$16 sps:$4 sm:$0xff]   ;;  %v1465_v13 = vld [vmem:[#allocation2 + $0x48] ss:$16 sps:$4 sm:$0xff]   ;;  %v1466_v14 = vld [vmem:[#allocation2 + $0x64] ss:$16 sps:$4 sm:$0xff]  }
  0x2b   :  { %159 = vmatprep.subr.bf16.mxu0 %v1454_v6  ;;  %200 = vmatprep.subr.bf16.mxu1 %v1456_v7  ;;  %v1468_v15 = vld [vmem:[#allocation2 + $0x6c] ss:$16 sps:$4 sm:$0xff]   ;;  %v1470_v16 = vld [vmem:[#allocation2 + $0x60] ss:$16 sps:$4 sm:$0xff]   ;;  %v1471_v17 = vld [vmem:[#allocation2 + $0x68] ss:$16 sps:$4 sm:$0xff]  }
  0x2c   :  { %v1474_v18 = vld [vmem:[#allocation5 + $0x4] ss:$16 sps:$4 sm:$0xff]   ;;  %v1477_v19 = vld [vmem:[#allocation5 + $0xc] ss:$16 sps:$4 sm:$0xff]   ;;  %v48_v21 = vand.u32 127, %v47_v20  ;;  %v1773_v23 = vmov 0.0  }
  0x2d   :  { %vm153_vm1 = vcmask 523264   ;;  %v1472_v25 = vld [vmem:[#allocation5] ss:$16 sps:$4 sm:$0xff]   ;;  %v1475_v26 = vld [vmem:[#allocation5 + $0x8] ss:$16 sps:$4 sm:$0xff]  }
  0x2e   :  { %160 = vmatpush1.bf16.msra.mxu0 %v1458_v8  ;;  %201 = vmatpush1.bf16.msra.mxu1 %v1459_v9  ;;  %v1480_v28 = vld [vmem:[#allocation5 + $0x24] ss:$16 sps:$4 sm:$0xff]   ;;  %v1483_v29 = vld [vmem:[#allocation5 + $0x2c] ss:$16 sps:$4 sm:$0xff]   ;;  %v1478_v30 = vld [vmem:[#allocation5 + $0x20] ss:$16 sps:$4 sm:$0xff]  }
  0x2f   :  { %161 = vmatprep.subr.bf16.mxu0 %v1460_v10  ;;  %202 = vmatprep.subr.bf16.mxu1 %v1462_v11  ;;  %v1481_v31 = vld [vmem:[#allocation5 + $0x28] ss:$16 sps:$4 sm:$0xff]   ;;  %v1486_v32 = vld [vmem:[#allocation5 + $0x44] ss:$16 sps:$4 sm:$0xff]   ;;  %v1489_v33 = vld [vmem:[#allocation5 + $0x4c] ss:$16 sps:$4 sm:$0xff]  }
  0x30   :  { %v1484_v34 = vld [vmem:[#allocation5 + $0x40] ss:$16 sps:$4 sm:$0xff]   ;;  %v1487_v35 = vld [vmem:[#allocation5 + $0x48] ss:$16 sps:$4 sm:$0xff]   ;;  %v1492_v36 = vld [vmem:[#allocation5 + $0x64] ss:$16 sps:$4 sm:$0xff]  }
  0x31   :  { %v1495_v37 = vld [vmem:[#allocation5 + $0x6c] ss:$16 sps:$4 sm:$0xff]   ;;  %v1490_v38 = vld [vmem:[#allocation5 + $0x60] ss:$16 sps:$4 sm:$0xff]   ;;  %v1493_v39 = vld [vmem:[#allocation5 + $0x68] ss:$16 sps:$4 sm:$0xff]  }
  0x32   :  { %162 = vmatpush1.bf16.msra.mxu0 %v1464_v12  ;;  %203 = vmatpush1.bf16.msra.mxu1 %v1465_v13  ;;  %v1498_v40 = vld [vmem:[#allocation5 + $0x84] ss:$16 sps:$4 sm:$0xff]   ;;  %v1501_v41 = vld [vmem:[#allocation5 + $0x8c] ss:$16 sps:$4 sm:$0xff]   ;;  %v1496_v42 = vld [vmem:[#allocation5 + $0x80] ss:$16 sps:$4 sm:$0xff]  }
  0x33   :  { %163 = vmatprep.subr.bf16.mxu0 %v1466_v14  ;;  %204 = vmatprep.subr.bf16.mxu1 %v1468_v15  ;;  %v1499_v43 = vld [vmem:[#allocation5 + $0x88] ss:$16 sps:$4 sm:$0xff]   ;;  %v1504_v44 = vld [vmem:[#allocation5 + $0xa4] ss:$16 sps:$4 sm:$0xff]   ;;  %v1507_v45 = vld [vmem:[#allocation5 + $0xac] ss:$16 sps:$4 sm:$0xff]  }
  0x34   :  { %v1502_v46 = vld [vmem:[#allocation5 + $0xa0] ss:$16 sps:$4 sm:$0xff]   ;;  %v1505_v47 = vld [vmem:[#allocation5 + $0xa8] ss:$16 sps:$4 sm:$0xff]   ;;  %v1510_v48 = vld [vmem:[#allocation5 + $0xc4] ss:$16 sps:$4 sm:$0xff]  }
  0x35   :  { %v1513_v49 = vld [vmem:[#allocation5 + $0xcc] ss:$16 sps:$4 sm:$0xff]   ;;  %v1508_v50 = vld [vmem:[#allocation5 + $0xc0] ss:$16 sps:$4 sm:$0xff]   ;;  %v1511_v51 = vld [vmem:[#allocation5 + $0xc8] ss:$16 sps:$4 sm:$0xff]  }
  0x36   :  { %164 = vmatpush1.bf16.msra.mxu0 %v1470_v16  ;;  %205 = vmatpush1.bf16.msra.mxu1 %v1471_v17  ;;  %v1516_v52 = vld [vmem:[#allocation5 + $0xe4] ss:$16 sps:$4 sm:$0xff]   ;;  %v1519_v53 = vld [vmem:[#allocation5 + $0xec] ss:$16 sps:$4 sm:$0xff]   ;;  %v1514_v54 = vld [vmem:[#allocation5 + $0xe0] ss:$16 sps:$4 sm:$0xff]  }
  0x37   :  { %1061 = vmatprep.subr.bf16.mxu0 %v1474_v18  ;;  %1143 = vmatprep.subr.bf16.mxu1 %v1477_v19  ;;  %v1517_v55 = vld [vmem:[#allocation5 + $0xe8] ss:$16 sps:$4 sm:$0xff]   ;;  %v1522_v56 = vld [vmem:[#allocation5 + $0x104] ss:$16 sps:$4 sm:$0xff]   ;;  %v1525_v57 = vld [vmem:[#allocation5 + $0x10c] ss:$16 sps:$4 sm:$0xff]  }
  0x38   :  { %v1520_v58 = vld [vmem:[#allocation5 + $0x100] ss:$16 sps:$4 sm:$0xff]   ;;  %v1523_v59 = vld [vmem:[#allocation5 + $0x108] ss:$16 sps:$4 sm:$0xff]   ;;  %v1528_v60 = vld [vmem:[#allocation5 + $0x124] ss:$16 sps:$4 sm:$0xff]  }
  0x39   :  { %v1531_v61 = vld [vmem:[#allocation5 + $0x12c] ss:$16 sps:$4 sm:$0xff]   ;;  %v1526_v62 = vld [vmem:[#allocation5 + $0x120] ss:$16 sps:$4 sm:$0xff]   ;;  %v1529_v63 = vld [vmem:[#allocation5 + $0x128] ss:$16 sps:$4 sm:$0xff]  }
  0x3a   :  { %v1534_v0 = vld [vmem:[#allocation5 + $0x144] ss:$16 sps:$4 sm:$0xff]   ;;  %v1537_v1 = vld [vmem:[#allocation5 + $0x14c] ss:$16 sps:$4 sm:$0xff]   ;;  %v1532_v2 = vld [vmem:[#allocation5 + $0x140] ss:$16 sps:$4 sm:$0xff]  }
  0x3b   :  { %v1535_v3 = vld [vmem:[#allocation5 + $0x148] ss:$16 sps:$4 sm:$0xff]   ;;  %v1540_v4 = vld [vmem:[#allocation5 + $0x164] ss:$16 sps:$4 sm:$0xff]   ;;  %v1543_v5 = vld [vmem:[#allocation5 + $0x16c] ss:$16 sps:$4 sm:$0xff]  }
  0x3c   :  { %v1538_v6 = vld [vmem:[#allocation5 + $0x160] ss:$16 sps:$4 sm:$0xff]   ;;  %v1541_v7 = vld [vmem:[#allocation5 + $0x168] ss:$16 sps:$4 sm:$0xff]   ;;  %v1546_v8 = vld [vmem:[#allocation5 + $0x184] ss:$16 sps:$4 sm:$0xff]  }
  0x3d   :  { %v1549_v9 = vld [vmem:[#allocation5 + $0x18c] ss:$16 sps:$4 sm:$0xff]   ;;  %v1544_v10 = vld [vmem:[#allocation5 + $0x180] ss:$16 sps:$4 sm:$0xff]   ;;  %v1547_v11 = vld [vmem:[#allocation5 + $0x188] ss:$16 sps:$4 sm:$0xff]  }
  0x3e   :  { %v1552_v12 = vld [vmem:[#allocation5 + $0x1a4] ss:$16 sps:$4 sm:$0xff]   ;;  %v1555_v13 = vld [vmem:[#allocation5 + $0x1ac] ss:$16 sps:$4 sm:$0xff]   ;;  %v1550_v14 = vld [vmem:[#allocation5 + $0x1a0] ss:$16 sps:$4 sm:$0xff]  }
  0x3f   :  { %v1553_v15 = vld [vmem:[#allocation5 + $0x1a8] ss:$16 sps:$4 sm:$0xff]   ;;  %v1558_v16 = vld [vmem:[#allocation5 + $0x1c4] ss:$16 sps:$4 sm:$0xff]   ;;  %v1561_v17 = vld [vmem:[#allocation5 + $0x1cc] ss:$16 sps:$4 sm:$0xff]  }
  0x40   :  { %v1556_v18 = vld [vmem:[#allocation5 + $0x1c0] ss:$16 sps:$4 sm:$0xff]   ;;  %v1559_v19 = vld [vmem:[#allocation5 + $0x1c8] ss:$16 sps:$4 sm:$0xff]  }
  0xa7   :  { %v52_v22 = vpop.permute.xlu0 %51 }
  0xa8   :  { %vm53_vm0 = vcmp.eq.s32.totalorder %v48_v21, %v52_v22  ;;  %v1564_v21 = vld [vmem:[#allocation5 + $0x1e4] ss:$16 sps:$4 sm:$0xff]   ;;  %v1567_v22 = vld [vmem:[#allocation5 + $0x1ec] ss:$16 sps:$4 sm:$0xff]  }
  0xa9   :  { %v1273_v24 = vsel %vm53_vm0, 1.0, %v1773_v23  ;;  %v1562_v23 = vld [vmem:[#allocation5 + $0x1e0] ss:$16 sps:$4 sm:$0xff]  }
  0xaa   :  { %v56_v27 = vpack.c.bf16 %v1273_v24, %v1273_v24  ;;  %v1565_v24 = vld [vmem:[#allocation5 + $0x1e8] ss:$16 sps:$4 sm:$0xff]  }
  0xac   :  { %1290 = vmatmul.mubr.msk.bf16.vlgmr.msra.gmra.mrb[0].mxu0 %vm153_vm1, %v56_v27  ;;  %1291 = vmatmul.mubr.msk.bf16.vlgmr.msra.gmra.mrb[0].mxu1 %vm153_vm1, %v56_v27 }
  0xad   :  { %1062 = vmatpush1.bf16.msra.mxu0 %v1472_v25  ;;  %1144 = vmatpush1.bf16.msra.mxu1 %v1475_v26  ;;  %v1570_v25 = vld [vmem:[#allocation5 + $0x204] ss:$16 sps:$4 sm:$0xff]   ;;  %v1573_v26 = vld [vmem:[#allocation5 + $0x20c] ss:$16 sps:$4 sm:$0xff]  }
  0xae   :  { %1063 = vmatprep.subr.bf16.mxu0 %v1480_v28  ;;  %1145 = vmatprep.subr.bf16.mxu1 %v1483_v29 }
  0xb1   :  { %1064 = vmatpush1.bf16.msra.mxu0 %v1478_v30  ;;  %1146 = vmatpush1.bf16.msra.mxu1 %v1481_v31 }
  0xb2   :  { %1065 = vmatprep.subr.bf16.mxu0 %v1486_v32  ;;  %1147 = vmatprep.subr.bf16.mxu1 %v1489_v33 }
  0xb5   :  { %1066 = vmatpush1.bf16.msra.mxu0 %v1484_v34  ;;  %1148 = vmatpush1.bf16.msra.mxu1 %v1487_v35 }
  0xb6   :  { %1067 = vmatprep.subr.bf16.mxu0 %v1492_v36  ;;  %1149 = vmatprep.subr.bf16.mxu1 %v1495_v37 }
  0xb9   :  { %1068 = vmatpush1.bf16.msra.mxu0 %v1490_v38  ;;  %1150 = vmatpush1.bf16.msra.mxu1 %v1493_v39 }
  0xba   :  { %1069 = vmatprep.subr.bf16.mxu0 %v1498_v40  ;;  %1151 = vmatprep.subr.bf16.mxu1 %v1501_v41 }
  0xbd   :  { %1070 = vmatpush1.bf16.msra.mxu0 %v1496_v42  ;;  %1152 = vmatpush1.bf16.msra.mxu1 %v1499_v43 }
  0xbe   :  { %1071 = vmatprep.subr.bf16.mxu0 %v1504_v44  ;;  %1153 = vmatprep.subr.bf16.mxu1 %v1507_v45 }
  0xc1   :  { %1072 = vmatpush1.bf16.msra.mxu0 %v1502_v46  ;;  %1154 = vmatpush1.bf16.msra.mxu1 %v1505_v47 }
  0xc2   :  { %1073 = vmatprep.subr.bf16.mxu0 %v1510_v48  ;;  %1155 = vmatprep.subr.bf16.mxu1 %v1513_v49 }
  0xc5   :  { %1074 = vmatpush1.bf16.msra.mxu0 %v1508_v50  ;;  %1156 = vmatpush1.bf16.msra.mxu1 %v1511_v51  ;;  %v1568_v51 = vld [vmem:[#allocation5 + $0x200] ss:$16 sps:$4 sm:$0xff]  }
  0xc6   :  { %1075 = vmatprep.subr.bf16.mxu0 %v1516_v52  ;;  %1157 = vmatprep.subr.bf16.mxu1 %v1519_v53  ;;  %v1571_v52 = vld [vmem:[#allocation5 + $0x208] ss:$16 sps:$4 sm:$0xff]  }
  0xc9   :  { %1076 = vmatpush1.bf16.msra.mxu0 %v1514_v54  ;;  %1158 = vmatpush1.bf16.msra.mxu1 %v1517_v55  ;;  %v1576_v54 = vld [vmem:[#allocation5 + $0x224] ss:$16 sps:$4 sm:$0xff]   ;;  %v1579_v55 = vld [vmem:[#allocation5 + $0x22c] ss:$16 sps:$4 sm:$0xff]  }
  0xca   :  { %1077 = vmatprep.subr.bf16.mxu0 %v1522_v56  ;;  %1159 = vmatprep.subr.bf16.mxu1 %v1525_v57  ;;  %v1574_v57 = vld [vmem:[#allocation5 + $0x220] ss:$16 sps:$4 sm:$0xff]  }
  0xcd   :  { %1078 = vmatpush1.bf16.msra.mxu0 %v1520_v58  ;;  %1160 = vmatpush1.bf16.msra.mxu1 %v1523_v59  ;;  %v1577_v58 = vld [vmem:[#allocation5 + $0x228] ss:$16 sps:$4 sm:$0xff]   ;;  %v1582_v59 = vld [vmem:[#allocation5 + $0x244] ss:$16 sps:$4 sm:$0xff]  }
  0xce   :  { %1079 = vmatprep.subr.bf16.mxu0 %v1528_v60  ;;  %1161 = vmatprep.subr.bf16.mxu1 %v1531_v61  ;;  %v1585_v60 = vld [vmem:[#allocation5 + $0x24c] ss:$16 sps:$4 sm:$0xff]   ;;  %v1580_v61 = vld [vmem:[#allocation5 + $0x240] ss:$16 sps:$4 sm:$0xff]  }
  0xd1   :  { %1080 = vmatpush1.bf16.msra.mxu0 %v1526_v62  ;;  %1162 = vmatpush1.bf16.msra.mxu1 %v1529_v63  ;;  %v1583_v62 = vld [vmem:[#allocation5 + $0x248] ss:$16 sps:$4 sm:$0xff]   ;;  %v1588_v63 = vld [vmem:[#allocation5 + $0x264] ss:$16 sps:$4 sm:$0xff]  }
  0xd2   :  { %1081 = vmatprep.subr.bf16.mxu0 %v1534_v0  ;;  %1163 = vmatprep.subr.bf16.mxu1 %v1537_v1  ;;  %v1591_v0 = vld [vmem:[#allocation5 + $0x26c] ss:$16 sps:$4 sm:$0xff]   ;;  %v1586_v1 = vld [vmem:[#allocation5 + $0x260] ss:$16 sps:$4 sm:$0xff]  }
  0xd5   :  { %1082 = vmatpush1.bf16.msra.mxu0 %v1532_v2  ;;  %1164 = vmatpush1.bf16.msra.mxu1 %v1535_v3  ;;  %v1589_v2 = vld [vmem:[#allocation5 + $0x268] ss:$16 sps:$4 sm:$0xff]   ;;  %v1594_v3 = vld [vmem:[#allocation5 + $0x284] ss:$16 sps:$4 sm:$0xff]  }
  0xd6   :  { %1083 = vmatprep.subr.bf16.mxu0 %v1540_v4  ;;  %1165 = vmatprep.subr.bf16.mxu1 %v1543_v5  ;;  %v1597_v4 = vld [vmem:[#allocation5 + $0x28c] ss:$16 sps:$4 sm:$0xff]   ;;  %v1592_v5 = vld [vmem:[#allocation5 + $0x280] ss:$16 sps:$4 sm:$0xff]  }
  0xd9   :  { %1084 = vmatpush1.bf16.msra.mxu0 %v1538_v6  ;;  %1166 = vmatpush1.bf16.msra.mxu1 %v1541_v7  ;;  %v1595_v6 = vld [vmem:[#allocation5 + $0x288] ss:$16 sps:$4 sm:$0xff]   ;;  %v1600_v7 = vld [vmem:[#allocation5 + $0x2a4] ss:$16 sps:$4 sm:$0xff]  }
  0xda   :  { %1085 = vmatprep.subr.bf16.mxu0 %v1546_v8  ;;  %1167 = vmatprep.subr.bf16.mxu1 %v1549_v9  ;;  %v1603_v8 = vld [vmem:[#allocation5 + $0x2ac] ss:$16 sps:$4 sm:$0xff]   ;;  %v1598_v9 = vld [vmem:[#allocation5 + $0x2a0] ss:$16 sps:$4 sm:$0xff]  }
  0xdd   :  { %1086 = vmatpush1.bf16.msra.mxu0 %v1544_v10  ;;  %1168 = vmatpush1.bf16.msra.mxu1 %v1547_v11  ;;  %v1601_v10 = vld [vmem:[#allocation5 + $0x2a8] ss:$16 sps:$4 sm:$0xff]   ;;  %v1606_v11 = vld [vmem:[#allocation5 + $0x2c4] ss:$16 sps:$4 sm:$0xff]  }
  0xde   :  { %1087 = vmatprep.subr.bf16.mxu0 %v1552_v12  ;;  %1169 = vmatprep.subr.bf16.mxu1 %v1555_v13  ;;  %v1609_v12 = vld [vmem:[#allocation5 + $0x2cc] ss:$16 sps:$4 sm:$0xff]   ;;  %v1604_v13 = vld [vmem:[#allocation5 + $0x2c0] ss:$16 sps:$4 sm:$0xff]  }
  0xe1   :  { %1088 = vmatpush1.bf16.msra.mxu0 %v1550_v14  ;;  %1170 = vmatpush1.bf16.msra.mxu1 %v1553_v15  ;;  %v1607_v14 = vld [vmem:[#allocation5 + $0x2c8] ss:$16 sps:$4 sm:$0xff]   ;;  %v1612_v15 = vld [vmem:[#allocation5 + $0x2e4] ss:$16 sps:$4 sm:$0xff]  }
  0xe2   :  { %1089 = vmatprep.subr.bf16.mxu0 %v1558_v16  ;;  %1171 = vmatprep.subr.bf16.mxu1 %v1561_v17  ;;  %v1615_v16 = vld [vmem:[#allocation5 + $0x2ec] ss:$16 sps:$4 sm:$0xff]  }
  0xe5   :  { %1090 = vmatpush1.bf16.msra.mxu0 %v1556_v18  ;;  %1172 = vmatpush1.bf16.msra.mxu1 %v1559_v19  ;;  %v1610_v18 = vld [vmem:[#allocation5 + $0x2e0] ss:$16 sps:$4 sm:$0xff]   ;;  %v1613_v19 = vld [vmem:[#allocation5 + $0x2e8] ss:$16 sps:$4 sm:$0xff]  }
  0xe6   :  { %1091 = vmatprep.subr.bf16.mxu0 %v1564_v21  ;;  %1173 = vmatprep.subr.bf16.mxu1 %v1567_v22  ;;  %v1618_v21 = vld [vmem:[#allocation5 + $0x304] ss:$16 sps:$4 sm:$0xff]   ;;  %v1621_v22 = vld [vmem:[#allocation5 + $0x30c] ss:$16 sps:$4 sm:$0xff]  }
  0xe9   :  { %1092 = vmatpush1.bf16.msra.mxu0 %v1562_v23  ;;  %1174 = vmatpush1.bf16.msra.mxu1 %v1565_v24  ;;  %v1616_v23 = vld [vmem:[#allocation5 + $0x300] ss:$16 sps:$4 sm:$0xff]   ;;  %v1619_v24 = vld [vmem:[#allocation5 + $0x308] ss:$16 sps:$4 sm:$0xff]  }
  0xea   :  { %1102 = vmatprep.subr.bf16.mxu0 %v1570_v25  ;;  %1184 = vmatprep.subr.bf16.mxu1 %v1573_v26  ;;  %v1624_v25 = vld [vmem:[#allocation5 + $0x324] ss:$16 sps:$4 sm:$0xff]   ;;  %v1627_v26 = vld [vmem:[#allocation5 + $0x32c] ss:$16 sps:$4 sm:$0xff]  }
 0x17f   :  { %v191_v27 = vpop.f32.mrb[0].mxu0  ;;  %v1828_v28 = vpop.f32.mrb[0].mxu1 }
 0x180   :  { %v1292_v29 = vmul.f32 -1.442695, %v191_v27  ;;  %v193_v30 = vpop.f32.mrb[1].mxu0  ;;  %v234_v31 = vpop.f32.mrb[1].mxu1  ;;  %v1294_v17 = vmul.f32 -1.442695, %v1828_v28 }
 0x181   :  { %v1293_v32 = vmul.f32 -1.442695, %v193_v30  ;;  %v1295_v33 = vmul.f32 -1.442695, %v234_v31  ;;  %v195_v34 = vpop.f32.mrb[2].mxu0  ;;  %v236_v35 = vpop.f32.mrb[2].mxu1 }
 0x182   :  { %1664 = vpow2.f32 %v1292_v29  ;;  %v196_v36 = vpop.f32.mrb[3].mxu0  ;;  %v237_v37 = vpop.f32.mrb[3].mxu1  ;;  %v1625_v29 = vld [vmem:[#allocation5 + $0x328] ss:$16 sps:$4 sm:$0xff]   ;;  %v1636_v35 = vld [vmem:[#allocation5 + $0x364] ss:$16 sps:$4 sm:$0xff]  }
 0x183   :  { %1666 = vpow2.f32 %v1293_v32  ;;  %v1628_v32 = vld [vmem:[#allocation5 + $0x340] ss:$16 sps:$4 sm:$0xff]   ;;  %v1639_v36 = vld [vmem:[#allocation5 + $0x36c] ss:$16 sps:$4 sm:$0xff]  }
 0x184   :  { %1668 = vpow2.f32 %v1295_v33  ;;  %v1631_v33 = vld [vmem:[#allocation5 + $0x348] ss:$16 sps:$4 sm:$0xff]  }
 0x18c   :  { %v1665_v38 = vpop.eup %1664 }
 0x18d   :  { %v251_v39 = vadd.f32 1.0, %v1665_v38  ;;  %v1667_v40 = vpop.eup %1666  ;;  %v1634_v38 = vld [vmem:[#allocation5 + $0x360] ss:$16 sps:$4 sm:$0xff]  }
 0x18e   :  { %v1669_v41 = vpop.eup %1668  ;;  %v252_v42 = vadd.f32 1.0, %v1667_v40  ;;  %v1642_v40 = vld [vmem:[#allocation5 + $0x384] ss:$16 sps:$4 sm:$0xff]  }
 0x18f   :  { %1670 = vrcp.f32 %v251_v39  ;;  %v254_v43 = vadd.f32 1.0, %v1669_v41  ;;  %v1637_v39 = vld [vmem:[#allocation5 + $0x368] ss:$16 sps:$4 sm:$0xff]   ;;  %v1645_v41 = vld [vmem:[#allocation5 + $0x38c] ss:$16 sps:$4 sm:$0xff]  }
 0x190   :  { %1672 = vrcp.f32 %v252_v42  ;;  %v1640_v42 = vld [vmem:[#allocation5 + $0x380] ss:$16 sps:$4 sm:$0xff]  }
 0x191   :  { %1674 = vrcp.f32 %v254_v43  ;;  %v1643_v43 = vld [vmem:[#allocation5 + $0x388] ss:$16 sps:$4 sm:$0xff]  }
 0x192   :  { %1676 = vpow2.f32 %v1294_v17 }
 0x199   :  { %v1671_v44 = vpop.eup %1670 }
 0x19a   :  { %v1673_v45 = vpop.eup %1672  ;;  %v263_v46 = vmul.f32 %v1671_v44, %v191_v27  ;;  %v1622_v27 = vld [vmem:[#allocation5 + $0x320] ss:$16 sps:$4 sm:$0xff]   ;;  %v1648_v44 = vld [vmem:[#allocation5 + $0x3a4] ss:$16 sps:$4 sm:$0xff]  }
 0x19b   :  { %v1675_v47 = vpop.eup %1674  ;;  %v264_v48 = vmul.f32 %v1673_v45, %v193_v30  ;;  %v1630_v30 = vld [vmem:[#allocation5 + $0x344] ss:$16 sps:$4 sm:$0xff]   ;;  %v1651_v45 = vld [vmem:[#allocation5 + $0x3ac] ss:$16 sps:$4 sm:$0xff]  }
 0x19c   :  { %v266_v49 = vmul.f32 %v1675_v47, %v234_v31  ;;  %v267_v53 = vpack.c.bf16 %v263_v46, %v263_v46  ;;  %v1633_v31 = vld [vmem:[#allocation5 + $0x34c] ss:$16 sps:$4 sm:$0xff]   ;;  %v1677_v34 = vpop.eup %1676  ;;  %v1646_v46 = vld [vmem:[#allocation5 + $0x3a0] ss:$16 sps:$4 sm:$0xff]   ;;  %v1649_v47 = vld [vmem:[#allocation5 + $0x3a8] ss:$16 sps:$4 sm:$0xff]  }
 0x19d   :  { %v268_v50 = vpack.c.bf16 %v264_v48, %v264_v48  ;;  %v253_v37 = vadd.f32 1.0, %v1677_v34  ;;  %v1654_v48 = vld [vmem:[#allocation5 + $0x3c4] ss:$16 sps:$4 sm:$0xff]  }
 0x19e   :  { %v270_v56 = vpack.c.bf16 %v266_v49, %v266_v49  ;;  %v1657_v49 = vld [vmem:[#allocation5 + $0x3cc] ss:$16 sps:$4 sm:$0xff]  }
 0x19f   :  { %1093 = vmatprep.mubr.bf16.mxu0 %v268_v50  ;;  %1175 = vmatprep.mubr.bf16.mxu1 %v268_v50  ;;  %1678 = vrcp.f32 %v253_v37  ;;  %v1652_v50 = vld [vmem:[#allocation5 + $0x3c0] ss:$16 sps:$4 sm:$0xff]  }
 0x1a0   :  { %1094 = vmatmul.mubr.bf16.vlgmr.msra.gmra.mrb[4].mxu0 %v267_v53  ;;  %1176 = vmatmul.mubr.bf16.vlgmr.msra.gmra.mrb[4].mxu1 %v267_v53  ;;  %v1663_v53 = vld [vmem:[#allocation5 + $0x3ec] ss:$16 sps:$4 sm:$0xff]  }
 0x1a1   :  { %1103 = vmatpush1.bf16.msra.mxu0 %v1568_v51  ;;  %1185 = vmatpush1.bf16.msra.mxu1 %v1571_v52  ;;  %v1655_v51 = vld [vmem:[#allocation5 + $0x3c8] ss:$16 sps:$4 sm:$0xff]   ;;  %v1660_v52 = vld [vmem:[#allocation5 + $0x3e4] ss:$16 sps:$4 sm:$0xff]  }
 0x1a2   :  { %1134 = vmatprep.mubr.bf16.mxu0 %v270_v56  ;;  %1216 = vmatprep.mubr.bf16.mxu1 %v270_v56  ;;  %v1661_v56 = vld [vmem:[#allocation5 + $0x3e8] ss:$16 sps:$4 sm:$0xff]  }
 0x1a3   :  { %1104 = vmatprep.subr.bf16.mxu0 %v1576_v54  ;;  %1186 = vmatprep.subr.bf16.mxu1 %v1579_v55  ;;  %v1658_v55 = vld [vmem:[#allocation5 + $0x3e0] ss:$16 sps:$4 sm:$0xff]  }
 0x1a5   :  { %1105 = vmatpush1.bf16.msra.mxu0 %v1574_v57  ;;  %1187 = vmatpush1.bf16.msra.mxu1 %v1577_v58 }
 0x1a6   :  { %1106 = vmatprep.subr.bf16.mxu0 %v1582_v59  ;;  %1188 = vmatprep.subr.bf16.mxu1 %v1585_v60  ;;  %v402_v59 = vshrl.u32 %v47_v20, 7 }
 0x1a8   :  { %v403_v60 = vsub.s32 0, %v402_v59 }
 0x1a9   :  { %1107 = vmatpush1.bf16.msra.mxu0 %v1580_v61  ;;  %1189 = vmatpush1.bf16.msra.mxu1 %v1583_v62  ;;  %v1679_v54 = vpop.eup %1678  ;;  %v411_v61 = vsub.s32 2, %v402_v59  ;;  %v399_v62 = vld [vmem:[%s1851_s3] sm:$0xf]  ;;  %s1774_s3 = smov [#allocation7]  }
 0x1aa   :  { %1108 = vmatprep.subr.bf16.mxu0 %v1588_v63  ;;  %1190 = vmatprep.subr.bf16.mxu1 %v1591_v0  ;;  %v265_v57 = vmul.f32 %v1679_v54, %v1828_v28  ;;  %v407_v63 = vsub.s32 1, %v402_v59  ;;  %v415_v0 = vsub.s32 3, %v402_v59  ;;  %s1263_s16 = sshll.u32 %s1774_s3, 4  ;;  %s1264_s16 = int_to_ptr.vmem [resolvable:$true] %s1263_s16 }
 0x1ab   :  { %s1740_s17 = scalar_lea.vmem %s1264_s16, 512  ;;  %p1745_p3 = scmp.lt.s32.totalorder %s1264_s16, %s1264_s16 }
 0x1ac   :  { %v269_v58 = vpack.c.bf16 %v265_v57, %v265_v57  ;;  %v408_v28 = vrot.slane %v399_v62, %v407_v63  ;;  %p1741_p2 = scmp.ne.s32.totalorder %s1264_s16, %s1740_s17  ;;  %p1746_p4 = scmp.lt.s32.totalorder %s1740_s17, %s1740_s17 }
 0x1ad   :  { %1109 = vmatpush1.bf16.msra.mxu0 %v1586_v1  ;;  %1191 = vmatpush1.bf16.msra.mxu1 %v1589_v2  ;;  %v404_v1 = vrot.slane %v399_v62, %v403_v60  ;;  %v412_v2 = vrot.slane %v399_v62, %v411_v61 }
 0x1ae   :  { %1110 = vmatprep.subr.bf16.mxu0 %v1594_v3  ;;  %1192 = vmatprep.subr.bf16.mxu1 %v1597_v4  ;;  %v416_v3 = vrot.slane %v399_v62, %v415_v0  ;;  %p1747_p5 = por %p1746_p4, %p1745_p3 }
 0x1b0   :  { %p1748_p6 = pnand %p1747_p5, %p1741_p2 }
 0x1b1   :  { %1111 = vmatpush1.bf16.msra.mxu0 %v1592_v5  ;;  %1193 = vmatpush1.bf16.msra.mxu1 %v1595_v6 }
 0x1b2   :  { %1112 = vmatprep.subr.bf16.mxu0 %v1600_v7  ;;  %1194 = vmatprep.subr.bf16.mxu1 %v1603_v8 }
 0x1b5   :  { %1113 = vmatpush1.bf16.msra.mxu0 %v1598_v9  ;;  %1195 = vmatpush1.bf16.msra.mxu1 %v1601_v10 }
 0x1b6   :  { %1114 = vmatprep.subr.bf16.mxu0 %v1606_v11  ;;  %1196 = vmatprep.subr.bf16.mxu1 %v1609_v12 }
 0x1b9   :  { %1115 = vmatpush1.bf16.msra.mxu0 %v1604_v13  ;;  %1197 = vmatpush1.bf16.msra.mxu1 %v1607_v14 }
 0x1ba   :  { %1116 = vmatprep.subr.bf16.mxu0 %v1612_v15  ;;  %1198 = vmatprep.subr.bf16.mxu1 %v1615_v16 }
 0x1bd   :  { %1117 = vmatpush1.bf16.msra.mxu0 %v1610_v18  ;;  %1199 = vmatpush1.bf16.msra.mxu1 %v1613_v19 }
 0x1be   :  { %1118 = vmatprep.subr.bf16.mxu0 %v1618_v21  ;;  %1200 = vmatprep.subr.bf16.mxu1 %v1621_v22 }
 0x1c1   :  { %1119 = vmatpush1.bf16.msra.mxu0 %v1616_v23  ;;  %1201 = vmatpush1.bf16.msra.mxu1 %v1619_v24 }
 0x1c2   :  { %1120 = vmatprep.subr.bf16.mxu0 %v1624_v25  ;;  %1202 = vmatprep.subr.bf16.mxu1 %v1627_v26 }
 0x1c5   :  { %1121 = vmatpush1.bf16.msra.mxu0 %v1622_v27  ;;  %1203 = vmatpush1.bf16.msra.mxu1 %v1625_v29 }
 0x1c6   :  { %1122 = vmatprep.subr.bf16.mxu0 %v1630_v30  ;;  %1204 = vmatprep.subr.bf16.mxu1 %v1633_v31 }
 0x1c9   :  { %1123 = vmatpush1.bf16.msra.mxu0 %v1628_v32  ;;  %1205 = vmatpush1.bf16.msra.mxu1 %v1631_v33 }
 0x1ca   :  { %1124 = vmatprep.subr.bf16.mxu0 %v1636_v35  ;;  %1206 = vmatprep.subr.bf16.mxu1 %v1639_v36 }
 0x1cd   :  { %1125 = vmatpush1.bf16.msra.mxu0 %v1634_v38  ;;  %1207 = vmatpush1.bf16.msra.mxu1 %v1637_v39 }
 0x1ce   :  { %1126 = vmatprep.subr.bf16.mxu0 %v1642_v40  ;;  %1208 = vmatprep.subr.bf16.mxu1 %v1645_v41 }
 0x1d1   :  { %1127 = vmatpush1.bf16.msra.mxu0 %v1640_v42  ;;  %1209 = vmatpush1.bf16.msra.mxu1 %v1643_v43 }
 0x1d2   :  { %1128 = vmatprep.subr.bf16.mxu0 %v1648_v44  ;;  %1210 = vmatprep.subr.bf16.mxu1 %v1651_v45 }
 0x1d5   :  { %1129 = vmatpush1.bf16.msra.mxu0 %v1646_v46  ;;  %1211 = vmatpush1.bf16.msra.mxu1 %v1649_v47 }
 0x1d6   :  { %1130 = vmatprep.subr.bf16.mxu0 %v1654_v48  ;;  %1212 = vmatprep.subr.bf16.mxu1 %v1657_v49 }
 0x1d9   :  { %1131 = vmatpush1.bf16.msra.mxu0 %v1652_v50  ;;  %1213 = vmatpush1.bf16.msra.mxu1 %v1655_v51 }
 0x1da   :  { %1132 = vmatprep.subr.bf16.mxu0 %v1660_v52  ;;  %1214 = vmatprep.subr.bf16.mxu1 %v1663_v53 }
 0x1dd   :  { %1133 = vmatpush1.bf16.msra.mxu0 %v1658_v55  ;;  %1215 = vmatpush1.bf16.msra.mxu1 %v1661_v56 }
 0x1e0   :  { %1135 = vmatmul.mubr.bf16.vlgmr.msra.gmra.mrb[4].mxu0 %v269_v58  ;;  %1217 = vmatmul.mubr.bf16.vlgmr.msra.gmra.mrb[4].mxu1 %v269_v58 }
 0x2b3   :  { %v1136_v4 = vpop.f32.mrb[4].mxu0  ;;  %v1218_v5 = vpop.f32.mrb[4].mxu1 }
 0x2b4   :  { %v1428_v6 = vadd.f32 %v1136_v4, %v404_v1  ;;  %v1430_v7 = vadd.f32 %v1218_v5, %v412_v2  ;;  %v1138_v8 = vpop.f32.mrb[5].mxu0  ;;  %v1220_v9 = vpop.f32.mrb[5].mxu1 }
 0x2b5   :  { %v1429_v10 = vadd.f32 %v1138_v8, %v408_v28  ;;  %v1431_v20 = vadd.f32 %v1220_v9, %v416_v3  ;;  %v1140_v11 = vpop.f32.mrb[6].mxu0  ;;  %v1222_v12 = vpop.f32.mrb[6].mxu1 }
 0x2b6   :  { %v1424_v13 = vmul.f32 -1.442695, %v1428_v6  ;;  %v1426_v14 = vmul.f32 -1.442695, %v1430_v7  ;;  %v1141_v15 = vpop.f32.mrb[7].mxu0  ;;  %v1223_v16 = vpop.f32.mrb[7].mxu1 }
 0x2b7   :  { %v1425_v17 = vmul.f32 -1.442695, %v1429_v10  ;;  %v1427_v18 = vmul.f32 -1.442695, %v1431_v20 }
 0x2b8   :  { %1680 = vpow2.f32 %v1424_v13 }
 0x2b9   :  { %1682 = vpow2.f32 %v1426_v14 }
 0x2ba   :  { %1684 = vpow2.f32 %v1425_v17 }
 0x2bb   :  { %1686 = vpow2.f32 %v1427_v18 }
 0x2c2   :  { %v1681_v19 = vpop.eup %1680 }
 0x2c3   :  { %v1683_v21 = vpop.eup %1682  ;;  %v1237_v22 = vadd.f32 1.0, %v1681_v19 }
 0x2c4   :  { %v1685_v23 = vpop.eup %1684  ;;  %v1239_v24 = vadd.f32 1.0, %v1683_v21 }
 0x2c5   :  { %v1687_v25 = vpop.eup %1686  ;;  %1688 = vrcp.f32 %v1237_v22  ;;  %v1238_v26 = vadd.f32 1.0, %v1685_v23 }
 0x2c6   :  { %1690 = vrcp.f32 %v1239_v24  ;;  %v1240_v27 = vadd.f32 1.0, %v1687_v25 }
 0x2c7   :  { %1692 = vrcp.f32 %v1238_v26 }
 0x2c8   :  { %1694 = vrcp.f32 %v1240_v27 }
 0x2cf   :  { %v1689_v29 = vpop.eup %1688 }
 0x2d0   :  { %v1691_v30 = vpop.eup %1690  ;;  %v1249_v31 = vmul.f32 %v1689_v29, %v1428_v6 }
 0x2d1   :  { %v1693_v32 = vpop.eup %1692  ;;  %v1251_v33 = vmul.f32 %v1691_v30, %v1430_v7 }
 0x2d2   :  { %v1695_v34 = vpop.eup %1694  ;;  %1253 = vst [vmem:[#allocation7] sm:$0xff] %v1249_v31  ;;  %v1250_v35 = vmul.f32 %v1693_v32, %v1429_v10 }
 0x2d3   :  { %1255 = vst [vmem:[#allocation7 + $0x10] sm:$0xff] %v1251_v33  ;;  %v1252_v36 = vmul.f32 %v1695_v34, %v1431_v20 }
 0x2d4   :  { %1254 = vst [vmem:[#allocation7 + $0x8] sm:$0xff] %v1250_v35 }
 0x2d5   :  { %1256 = vst [vmem:[#allocation7 + $0x18] sm:$0xff] %v1252_v36 }
 0x2d6   :  { %1751 = shalt.err (!%p1748_p6)
}
 0x2d7   :  { %s1752_s20 = scalar_lea.hbm %s1852_s4, 512 }
 0x2d8   :  { %p1753_p7 = scmp.ne.s32.totalorder %s1852_s4, %s1752_s20  ;;  %p1756_p8 = scmp.lt.u32.totalorder %s1752_s20, %s1852_s4 }
 0x2da   :  { %p1758_p9 = pnand %p1756_p8, %p1753_p7 }
 0x2dc   :  { %1761 = shalt.err (!%p1758_p9)
}
 0x2dd   :  { %1266 = dma.vmem_to_hbm [thread:$0]  %s1264_s16, 512, %s1852_s4, [#allocation4]  }
 0x2de   :  { %1766 = dma.done.wait [#allocation4], 512  }
 0x2df   :  { %1767 = vsyncadd [#allocation4], 4294966784 }
 0x2e0   :  { %1270 = vsyncpa [#allocation3], 1 }
 0x2e1   :  { %1271 = vsyncpa [#allocation6], 1 }
 0x2e2   :  { %1272 = vsyncpa [#allocation4], 1 }

</bundles_post_ra>
